<compile_context>
chip_gen: v5e
topology: v5e:2x2
jax: 0.10.0
libtpu: 0.0.40
codegen_flags: <defaults>
</compile_context>

<pallas_src>
import functools

import jax
import jax.numpy as jnp
from jax.experimental import pallas as pl
from jax.experimental.pallas import tpu as pltpu

LN_EPS = 1e-5
_SQRT_2_OVER_PI = 0.7978845608028654


def _layer_norm(v, g, b):
    mu = jnp.mean(v, axis=-1, keepdims=True)
    c = v - mu
    var = jnp.mean(c * c, axis=-1, keepdims=True)
    return c * jax.lax.rsqrt(var + LN_EPS) * g + b


def _gelu_tanh(v):
    return 0.5 * v * (1.0 + jnp.tanh(_SQRT_2_OVER_PI * (v + 0.044715 * v * v * v)))


def make_encoder_kernel(tb, L, D, H):
    Dh = D // H
    scale = 1.0 / (Dh ** 0.5)
    N = tb * L  # rows in the dense 2-D slab (L is a multiple of 8 -> layout-free reshape)

    def kernel(x_ref,
               g1_ref, b1_ref,
               wq_ref, bq_ref, wk_ref, bk_ref, wv_ref, bv_ref,
               wo_ref, bo_ref,
               g2_ref, b2_ref,
               w1_ref, bm1_ref, w2_ref, bm2_ref,
               o_ref):
        x = x_ref[...].astype(jnp.float32)                       # (tb, L, D)

        # ---- attention pre-norm, then dense (N, D) slab for the projections ----
        y2 = _layer_norm(x, g1_ref[...], b1_ref[...]).reshape(N, D)

        q = jnp.dot(y2, wq_ref[...], preferred_element_type=jnp.float32) + bq_ref[...]
        k = jnp.dot(y2, wk_ref[...], preferred_element_type=jnp.float32) + bk_ref[...]
        v = jnp.dot(y2, wv_ref[...], preferred_element_type=jnp.float32) + bv_ref[...]
        q = q.reshape(tb, L, D)
        k = k.reshape(tb, L, D)
        v = v.reshape(tb, L, D)

        # ---- multi-head attention (static unrolled head loop, batched einsums) ----
        # Output projection is folded per head:  attn @ Wo == sum_h head_h @ Wo[h*Dh:(h+1)*Dh, :]
        attn_acc = jnp.zeros((N, D), jnp.float32)
        for h in range(H):
            lo, hi = h * Dh, (h + 1) * Dh
            qh = q[:, :, lo:hi]                                  # (tb, L, Dh)
            kh = k[:, :, lo:hi]
            vh = v[:, :, lo:hi]
            s = jnp.einsum("bqd,bkd->bqk", qh, kh,
                           preferred_element_type=jnp.float32) * scale  # (tb, L, L)
            s = s - jnp.max(s, axis=-1, keepdims=True)
            e = jnp.exp(s)
            p = e * pl.reciprocal(jnp.sum(e, axis=-1, keepdims=True), approx=False)
            oh = jnp.einsum("bqk,bkd->bqd", p, vh,
                            preferred_element_type=jnp.float32)         # (tb, L, Dh)
            attn_acc = attn_acc + jnp.dot(oh.reshape(N, Dh), wo_ref[lo:hi, :],
                                          preferred_element_type=jnp.float32)

        x2 = x.reshape(N, D) + attn_acc + bo_ref[...]            # residual #1, (N, D)

        # ---- MLP pre-norm + MLP + residual #2 ----
        y2 = _layer_norm(x2, g2_ref[...], b2_ref[...])
        hid = jnp.dot(y2, w1_ref[...], preferred_element_type=jnp.float32) + bm1_ref[...]
        hid = _gelu_tanh(hid)
        mlp = jnp.dot(hid, w2_ref[...], preferred_element_type=jnp.float32) + bm2_ref[...]
        out = x2 + mlp

        o_ref[...] = out.reshape(tb, L, D).astype(o_ref.dtype)

    return kernel


def _pick_batch_block(B, L, D, itemsize):
    # Target a few MiB of x per grid step (amortize per-step overhead / keep DMAs big),
    # but keep >=2 grid steps when possible so the parallel batch axis can shard across
    # the two v7x TensorCores, and keep the double-buffered block safely inside VMEM
    # on every generation (v7x has only 64 MiB physical).
    row_bytes = max(L * D * itemsize, 1)
    target_bytes = 8 * 1024 * 1024
    tb = max(1, min(B, target_bytes // row_bytes))
    if B >= 2:
        tb = max(1, min(tb, B // 2))
    while B % tb:
        tb -= 1
    return max(tb, 1)


def transformer_encoder(x, params, *, num_heads, batch_block=None):
    """x: (B, L, D) f32.  params: dict of pre-transposed weights ((in, out) = PyTorch W.T)
    and (1, N) biases / LayerNorm affine rows.  Returns (B, L, D)."""
    B, L, D = x.shape
    H = num_heads
    assert D % H == 0, "embedding_dim must be divisible by num_heads"
    assert L % 8 == 0, "sequence length must be a multiple of 8 (sublane tiling)"
    M = params["w1"].shape[1]

    tb = batch_block if batch_block is not None else _pick_batch_block(B, L, D, x.dtype.itemsize)
    assert B % tb == 0, (B, tb)

    kernel = make_encoder_kernel(tb, L, D, H)

    def full(shape):
        return pl.BlockSpec(shape, lambda i, _n=len(shape): (0,) * _n)

    in_specs = [
        pl.BlockSpec((tb, L, D), lambda i: (i, 0, 0)),   # x batch tile
        full((1, D)), full((1, D)),                      # ln1 gamma / beta
        full((D, D)), full((1, D)),                      # Wq, bq
        full((D, D)), full((1, D)),                      # Wk, bk
        full((D, D)), full((1, D)),                      # Wv, bv
        full((D, D)), full((1, D)),                      # Wo, bo
        full((1, D)), full((1, D)),                      # ln2 gamma / beta
        full((D, M)), full((1, M)),                      # W1, b1
        full((M, D)), full((1, D)),                      # W2, b2
    ]

    return pl.pallas_call(
        kernel,
        out_shape=jax.ShapeDtypeStruct((B, L, D), x.dtype),
        grid_spec=pltpu.PrefetchScalarGridSpec(
            num_scalar_prefetch=0,
            grid=(B // tb,),
            in_specs=in_specs,
            out_specs=pl.BlockSpec((tb, L, D), lambda i: (i, 0, 0)),
        ),
        compiler_params=pltpu.CompilerParams(
            dimension_semantics=("parallel",),
            vmem_limit_bytes=48 * 1024 * 1024,   # > default scoped limit, < v7x 64 MiB physical
        ),
    )(x,
      params["ln1_g"], params["ln1_b"],
      params["wq"], params["bq"], params["wk"], params["bk"],
      params["wv"], params["bv"], params["wo"], params["bo"],
      params["ln2_g"], params["ln2_b"],
      params["w1"], params["b1"], params["w2"], params["b2"])


def transformer_encoder_ref(x, params, *, num_heads):
    """Pure-JAX reference mirroring the PyTorch eval-mode forward."""
    B, L, D = x.shape
    H = num_heads
    Dh = D // H
    scale = 1.0 / (Dh ** 0.5)

    def ln(v, g, b):
        mu = v.mean(-1, keepdims=True)
        c = v - mu
        var = (c * c).mean(-1, keepdims=True)
        return c * jax.lax.rsqrt(var + LN_EPS) * g + b

    y = ln(x, params["ln1_g"], params["ln1_b"])
    q = y @ params["wq"] + params["bq"]
    k = y @ params["wk"] + params["bk"]
    v = y @ params["wv"] + params["bv"]

    def split_heads(t):  # (B, L, D) -> (B, H, L, Dh), contiguous Dh chunks per head
        return t.reshape(B, L, H, Dh).transpose(0, 2, 1, 3)

    qh, kh, vh = split_heads(q), split_heads(k), split_heads(v)
    s = jnp.einsum("bhqd,bhkd->bhqk", qh, kh) * scale
    p = jax.nn.softmax(s, axis=-1)
    o = jnp.einsum("bhqk,bhkd->bhqd", p, vh)
    o = o.transpose(0, 2, 1, 3).reshape(B, L, D)
    attn = o @ params["wo"] + params["bo"]
    x1 = x + attn

    y = ln(x1, params["ln2_g"], params["ln2_b"])
    hid = _gelu_tanh(y @ params["w1"] + params["b1"])
    mlp = hid @ params["w2"] + params["b2"]
    return x1 + mlp


def init_params(key, D, M):
    ks = jax.random.split(key, 16)

    def linw(k, fi, fo):
        return (jax.random.normal(k, (fi, fo), jnp.float32) / jnp.sqrt(fi)).astype(jnp.float32)

    def row(k, n, scl=0.1):
        return (scl * jax.random.normal(k, (1, n), jnp.float32)).astype(jnp.float32)

    return {
        "ln1_g": 1.0 + row(ks[0], D), "ln1_b": row(ks[1], D),
        "wq": linw(ks[2], D, D), "bq": row(ks[3], D),
        "wk": linw(ks[4], D, D), "bk": row(ks[5], D),
        "wv": linw(ks[6], D, D), "bv": row(ks[7], D),
        "wo": linw(ks[8], D, D), "bo": row(ks[9], D),
        "ln2_g": 1.0 + row(ks[10], D), "ln2_b": row(ks[11], D),
        "w1": linw(ks[12], D, M), "b1": row(ks[13], M),
        "w2": linw(ks[14], M, D), "b2": row(ks[15], D),
    }


if __name__ == "__main__":
    key = jax.random.PRNGKey(0)
    B, L, D, H, M = 2, 8, 32, 4, 64   # batch, seq, embedding_dim, num_heads, mlp_size

    kx, kp = jax.random.split(key)
    x = jax.random.normal(kx, (B, L, D), dtype=jnp.float32)
    params = init_params(kp, D, M)

    y_ref = transformer_encoder_ref(x, params, num_heads=H)

    # Exercise both the per-row grid (2 parallel steps) and the TB-batched block path.
    for tb in (1, 2):
        y = transformer_encoder(x, params, num_heads=H, batch_block=tb)
        y = jax.block_until_ready(y)
        assert y.shape == (B, L, D), y.shape
        err = float(jnp.max(jnp.abs(y - y_ref)))
        assert err < 2e-2, f"batch_block={tb}: max abs err {err}"

    print("KERNEL_OK")
</pallas_src>

<mosaic_0001>
module attributes {stable_mosaic.version = 11 : i64} {
  func.func @kernel(%arg0: i32, %arg1: memref<1x8x32xf32, #tpu.memory_space<vmem>>, %arg2: memref<1x32xf32, #tpu.memory_space<vmem>>, %arg3: memref<1x32xf32, #tpu.memory_space<vmem>>, %arg4: memref<32x32xf32, #tpu.memory_space<vmem>>, %arg5: memref<1x32xf32, #tpu.memory_space<vmem>>, %arg6: memref<32x32xf32, #tpu.memory_space<vmem>>, %arg7: memref<1x32xf32, #tpu.memory_space<vmem>>, %arg8: memref<32x32xf32, #tpu.memory_space<vmem>>, %arg9: memref<1x32xf32, #tpu.memory_space<vmem>>, %arg10: memref<32x32xf32, #tpu.memory_space<vmem>>, %arg11: memref<1x32xf32, #tpu.memory_space<vmem>>, %arg12: memref<1x32xf32, #tpu.memory_space<vmem>>, %arg13: memref<1x32xf32, #tpu.memory_space<vmem>>, %arg14: memref<32x64xf32, #tpu.memory_space<vmem>>, %arg15: memref<1x64xf32, #tpu.memory_space<vmem>>, %arg16: memref<64x32xf32, #tpu.memory_space<vmem>>, %arg17: memref<1x32xf32, #tpu.memory_space<vmem>>, %arg18: memref<1x8x32xf32, #tpu.memory_space<vmem>>) attributes {dimension_semantics = [#tpu.dimension_semantics<parallel>], iteration_bounds = array<i64: 2>, scalar_prefetch = 0 : i64, scratch_operands = 0 : i64, tpu.core_type = #tpu.core_type<tc>, window_params = [{transform_indices = @transform_0, window_bounds = array<i64: 1, 8, 32>}, {pipeline_mode = #tpu.pipeline_mode<synchronous>, transform_indices = @transform_1, window_bounds = array<i64: 1, 32>}, {pipeline_mode = #tpu.pipeline_mode<synchronous>, transform_indices = @transform_2, window_bounds = array<i64: 1, 32>}, {pipeline_mode = #tpu.pipeline_mode<synchronous>, transform_indices = @transform_3, window_bounds = array<i64: 32, 32>}, {pipeline_mode = #tpu.pipeline_mode<synchronous>, transform_indices = @transform_4, window_bounds = array<i64: 1, 32>}, {pipeline_mode = #tpu.pipeline_mode<synchronous>, transform_indices = @transform_5, window_bounds = array<i64: 32, 32>}, {pipeline_mode = #tpu.pipeline_mode<synchronous>, transform_indices = @transform_6, window_bounds = array<i64: 1, 32>}, {pipeline_mode = #tpu.pipeline_mode<synchronous>, transform_indices = @transform_7, window_bounds = array<i64: 32, 32>}, {pipeline_mode = #tpu.pipeline_mode<synchronous>, transform_indices = @transform_8, window_bounds = array<i64: 1, 32>}, {pipeline_mode = #tpu.pipeline_mode<synchronous>, transform_indices = @transform_9, window_bounds = array<i64: 32, 32>}, {pipeline_mode = #tpu.pipeline_mode<synchronous>, transform_indices = @transform_10, window_bounds = array<i64: 1, 32>}, {pipeline_mode = #tpu.pipeline_mode<synchronous>, transform_indices = @transform_11, window_bounds = array<i64: 1, 32>}, {pipeline_mode = #tpu.pipeline_mode<synchronous>, transform_indices = @transform_12, window_bounds = array<i64: 1, 32>}, {pipeline_mode = #tpu.pipeline_mode<synchronous>, transform_indices = @transform_13, window_bounds = array<i64: 32, 64>}, {pipeline_mode = #tpu.pipeline_mode<synchronous>, transform_indices = @transform_14, window_bounds = array<i64: 1, 64>}, {pipeline_mode = #tpu.pipeline_mode<synchronous>, transform_indices = @transform_15, window_bounds = array<i64: 64, 32>}, {pipeline_mode = #tpu.pipeline_mode<synchronous>, transform_indices = @transform_16, window_bounds = array<i64: 1, 32>}, {transform_indices = @transform_17, window_bounds = array<i64: 1, 8, 32>}]} {
    %c0 = arith.constant 0 : index
    %c0_0 = arith.constant 0 : index
    %c0_1 = arith.constant 0 : index
    %0 = vector.load %arg1[%c0, %c0_0, %c0_1] : memref<1x8x32xf32, #tpu.memory_space<vmem>>, vector<1x8x32xf32>
    %c0_2 = arith.constant 0 : index
    %c0_3 = arith.constant 0 : index
    %1 = vector.load %arg2[%c0_2, %c0_3] : memref<1x32xf32, #tpu.memory_space<vmem>>, vector<1x32xf32>
    %c0_4 = arith.constant 0 : index
    %c0_5 = arith.constant 0 : index
    %2 = vector.load %arg3[%c0_4, %c0_5] : memref<1x32xf32, #tpu.memory_space<vmem>>, vector<1x32xf32>
    %cst = arith.constant dense<0.000000e+00> : vector<1x8xf32>
    %3 = vector.multi_reduction <add>, %0, %cst [2] : vector<1x8x32xf32> to vector<1x8xf32>
    %4 = vector.shape_cast %3 : vector<1x8xf32> to vector<1x8x1xf32>
    %cst_6 = arith.constant 3.200000e+01 : f32
    %5 = vector.broadcast %cst_6 : f32 to vector<1x8x1xf32>
    %6 = arith.divf %4, %5 : vector<1x8x1xf32>
    %7 = vector.broadcast %6 : vector<1x8x1xf32> to vector<1x8x32xf32>
    %8 = arith.subf %0, %7 : vector<1x8x32xf32>
    %9 = arith.mulf %8, %8 : vector<1x8x32xf32>
    %cst_7 = arith.constant dense<0.000000e+00> : vector<1x8xf32>
    %10 = vector.multi_reduction <add>, %9, %cst_7 [2] : vector<1x8x32xf32> to vector<1x8xf32>
    %11 = vector.shape_cast %10 : vector<1x8xf32> to vector<1x8x1xf32>
    %cst_8 = arith.constant 3.200000e+01 : f32
    %12 = vector.broadcast %cst_8 : f32 to vector<1x8x1xf32>
    %13 = arith.divf %11, %12 : vector<1x8x1xf32>
    %cst_9 = arith.constant 9.99999974E-6 : f32
    %14 = vector.broadcast %cst_9 : f32 to vector<1x8x1xf32>
    %15 = arith.addf %13, %14 : vector<1x8x1xf32>
    %16 = math.rsqrt %15 : vector<1x8x1xf32>
    %17 = vector.broadcast %16 : vector<1x8x1xf32> to vector<1x8x32xf32>
    %18 = arith.mulf %8, %17 : vector<1x8x32xf32>
    %19 = vector.shape_cast %1 : vector<1x32xf32> to vector<1x1x32xf32>
    %20 = vector.broadcast %19 : vector<1x1x32xf32> to vector<1x8x32xf32>
    %21 = arith.mulf %18, %20 : vector<1x8x32xf32>
    %22 = vector.shape_cast %2 : vector<1x32xf32> to vector<1x1x32xf32>
    %23 = vector.broadcast %22 : vector<1x1x32xf32> to vector<1x8x32xf32>
    %24 = arith.addf %21, %23 : vector<1x8x32xf32>
    %25 = vector.shape_cast %24 : vector<1x8x32xf32> to vector<8x32xf32>
    %c0_10 = arith.constant 0 : index
    %c0_11 = arith.constant 0 : index
    %26 = vector.load %arg4[%c0_10, %c0_11] : memref<32x32xf32, #tpu.memory_space<vmem>>, vector<32x32xf32>
    %cst_12 = arith.constant dense<0.000000e+00> : vector<8x32xf32>
    %27 = tpu.matmul %25, %26, %cst_12 {dimension_numbers = #tpu.dot_dimension_numbers<[1], [0], [0], [1], [0, 0, 1, 1], [], []>} : vector<8x32xf32>, vector<32x32xf32>, vector<8x32xf32> -> vector<8x32xf32>
    %c0_13 = arith.constant 0 : index
    %c0_14 = arith.constant 0 : index
    %28 = vector.load %arg5[%c0_13, %c0_14] : memref<1x32xf32, #tpu.memory_space<vmem>>, vector<1x32xf32>
    %29 = vector.broadcast %28 : vector<1x32xf32> to vector<8x32xf32>
    %30 = arith.addf %27, %29 : vector<8x32xf32>
    %c0_15 = arith.constant 0 : index
    %c0_16 = arith.constant 0 : index
    %31 = vector.load %arg6[%c0_15, %c0_16] : memref<32x32xf32, #tpu.memory_space<vmem>>, vector<32x32xf32>
    %cst_17 = arith.constant dense<0.000000e+00> : vector<8x32xf32>
    %32 = tpu.matmul %25, %31, %cst_17 {dimension_numbers = #tpu.dot_dimension_numbers<[1], [0], [0], [1], [0, 0, 1, 1], [], []>} : vector<8x32xf32>, vector<32x32xf32>, vector<8x32xf32> -> vector<8x32xf32>
    %c0_18 = arith.constant 0 : index
    %c0_19 = arith.constant 0 : index
    %33 = vector.load %arg7[%c0_18, %c0_19] : memref<1x32xf32, #tpu.memory_space<vmem>>, vector<1x32xf32>
    %34 = vector.broadcast %33 : vector<1x32xf32> to vector<8x32xf32>
    %35 = arith.addf %32, %34 : vector<8x32xf32>
    %c0_20 = arith.constant 0 : index
    %c0_21 = arith.constant 0 : index
    %36 = vector.load %arg8[%c0_20, %c0_21] : memref<32x32xf32, #tpu.memory_space<vmem>>, vector<32x32xf32>
    %cst_22 = arith.constant dense<0.000000e+00> : vector<8x32xf32>
    %37 = tpu.matmul %25, %36, %cst_22 {dimension_numbers = #tpu.dot_dimension_numbers<[1], [0], [0], [1], [0, 0, 1, 1], [], []>} : vector<8x32xf32>, vector<32x32xf32>, vector<8x32xf32> -> vector<8x32xf32>
    %c0_23 = arith.constant 0 : index
    %c0_24 = arith.constant 0 : index
    %38 = vector.load %arg9[%c0_23, %c0_24] : memref<1x32xf32, #tpu.memory_space<vmem>>, vector<1x32xf32>
    %39 = vector.broadcast %38 : vector<1x32xf32> to vector<8x32xf32>
    %40 = arith.addf %37, %39 : vector<8x32xf32>
    %41 = vector.shape_cast %30 : vector<8x32xf32> to vector<1x8x32xf32>
    %42 = vector.shape_cast %35 : vector<8x32xf32> to vector<1x8x32xf32>
    %43 = vector.shape_cast %40 : vector<8x32xf32> to vector<1x8x32xf32>
    %cst_25 = arith.constant 0.000000e+00 : f32
    %44 = vector.broadcast %cst_25 : f32 to vector<8x32xf32>
    %45 = vector.extract_strided_slice %41 {offsets = [0, 0, 0], sizes = [1, 8, 8], strides = [1, 1, 1]} : vector<1x8x32xf32> to vector<1x8x8xf32>
    %46 = vector.extract_strided_slice %42 {offsets = [0, 0, 0], sizes = [1, 8, 8], strides = [1, 1, 1]} : vector<1x8x32xf32> to vector<1x8x8xf32>
    %47 = vector.extract_strided_slice %43 {offsets = [0, 0, 0], sizes = [1, 8, 8], strides = [1, 1, 1]} : vector<1x8x32xf32> to vector<1x8x8xf32>
    "tpu.trace_start"() <{level = 10 : i32, message = "bqd,bkd->bqk"}> : () -> ()
    %cst_26 = arith.constant dense<0.000000e+00> : vector<1x8x8xf32>
    %48 = tpu.matmul %45, %46, %cst_26 {dimension_numbers = #tpu.dot_dimension_numbers<[2], [2], [1], [1], [0, 0, 0, 1, 1, 1], [0], [0]>} : vector<1x8x8xf32>, vector<1x8x8xf32>, vector<1x8x8xf32> -> vector<1x8x8xf32>
    "tpu.trace_stop"() : () -> ()
    %cst_27 = arith.constant 0.353553385 : f32
    %49 = vector.broadcast %cst_27 : f32 to vector<1x8x8xf32>
    %50 = arith.mulf %48, %49 : vector<1x8x8xf32>
    %cst_28 = arith.constant dense<0xFF800000> : vector<1x8xf32>
    %51 = vector.multi_reduction <maximumf>, %50, %cst_28 [2] : vector<1x8x8xf32> to vector<1x8xf32>
    %52 = vector.shape_cast %51 : vector<1x8xf32> to vector<1x8x1xf32>
    %53 = vector.broadcast %52 : vector<1x8x1xf32> to vector<1x8x8xf32>
    %54 = arith.subf %50, %53 : vector<1x8x8xf32>
    %55 = math.exp %54 : vector<1x8x8xf32>
    %cst_29 = arith.constant dense<0.000000e+00> : vector<1x8xf32>
    %56 = vector.multi_reduction <add>, %55, %cst_29 [2] : vector<1x8x8xf32> to vector<1x8xf32>
    %57 = vector.shape_cast %56 : vector<1x8xf32> to vector<1x8x1xf32>
    %58 = tpu.reciprocal %57 : vector<1x8x1xf32> -> vector<1x8x1xf32>
    %59 = vector.broadcast %58 : vector<1x8x1xf32> to vector<1x8x8xf32>
    %60 = arith.mulf %55, %59 : vector<1x8x8xf32>
    "tpu.trace_start"() <{level = 10 : i32, message = "bqk,bkd->bqd"}> : () -> ()
    %cst_30 = arith.constant dense<0.000000e+00> : vector<1x8x8xf32>
    %61 = tpu.matmul %60, %47, %cst_30 {dimension_numbers = #tpu.dot_dimension_numbers<[2], [1], [1], [2], [0, 0, 0, 1, 1, 2], [0], [0]>} : vector<1x8x8xf32>, vector<1x8x8xf32>, vector<1x8x8xf32> -> vector<1x8x8xf32>
    "tpu.trace_stop"() : () -> ()
    %62 = vector.shape_cast %61 : vector<1x8x8xf32> to vector<8x8xf32>
    %c0_31 = arith.constant 0 : index
    %c0_32 = arith.constant 0 : index
    %63 = vector.load %arg10[%c0_31, %c0_32] : memref<32x32xf32, #tpu.memory_space<vmem>>, vector<8x32xf32>
    %cst_33 = arith.constant dense<0.000000e+00> : vector<8x32xf32>
    %64 = tpu.matmul %62, %63, %cst_33 {dimension_numbers = #tpu.dot_dimension_numbers<[1], [0], [0], [1], [0, 0, 1, 1], [], []>} : vector<8x8xf32>, vector<8x32xf32>, vector<8x32xf32> -> vector<8x32xf32>
    %65 = arith.addf %44, %64 : vector<8x32xf32>
    %66 = vector.extract_strided_slice %41 {offsets = [0, 0, 8], sizes = [1, 8, 8], strides = [1, 1, 1]} : vector<1x8x32xf32> to vector<1x8x8xf32>
    %67 = vector.extract_strided_slice %42 {offsets = [0, 0, 8], sizes = [1, 8, 8], strides = [1, 1, 1]} : vector<1x8x32xf32> to vector<1x8x8xf32>
    %68 = vector.extract_strided_slice %43 {offsets = [0, 0, 8], sizes = [1, 8, 8], strides = [1, 1, 1]} : vector<1x8x32xf32> to vector<1x8x8xf32>
    "tpu.trace_start"() <{level = 10 : i32, message = "bqd,bkd->bqk"}> : () -> ()
    %cst_34 = arith.constant dense<0.000000e+00> : vector<1x8x8xf32>
    %69 = tpu.matmul %66, %67, %cst_34 {dimension_numbers = #tpu.dot_dimension_numbers<[2], [2], [1], [1], [0, 0, 0, 1, 1, 1], [0], [0]>} : vector<1x8x8xf32>, vector<1x8x8xf32>, vector<1x8x8xf32> -> vector<1x8x8xf32>
    "tpu.trace_stop"() : () -> ()
    %cst_35 = arith.constant 0.353553385 : f32
    %70 = vector.broadcast %cst_35 : f32 to vector<1x8x8xf32>
    %71 = arith.mulf %69, %70 : vector<1x8x8xf32>
    %cst_36 = arith.constant dense<0xFF800000> : vector<1x8xf32>
    %72 = vector.multi_reduction <maximumf>, %71, %cst_36 [2] : vector<1x8x8xf32> to vector<1x8xf32>
    %73 = vector.shape_cast %72 : vector<1x8xf32> to vector<1x8x1xf32>
    %74 = vector.broadcast %73 : vector<1x8x1xf32> to vector<1x8x8xf32>
    %75 = arith.subf %71, %74 : vector<1x8x8xf32>
    %76 = math.exp %75 : vector<1x8x8xf32>
    %cst_37 = arith.constant dense<0.000000e+00> : vector<1x8xf32>
    %77 = vector.multi_reduction <add>, %76, %cst_37 [2] : vector<1x8x8xf32> to vector<1x8xf32>
    %78 = vector.shape_cast %77 : vector<1x8xf32> to vector<1x8x1xf32>
    %79 = tpu.reciprocal %78 : vector<1x8x1xf32> -> vector<1x8x1xf32>
    %80 = vector.broadcast %79 : vector<1x8x1xf32> to vector<1x8x8xf32>
    %81 = arith.mulf %76, %80 : vector<1x8x8xf32>
    "tpu.trace_start"() <{level = 10 : i32, message = "bqk,bkd->bqd"}> : () -> ()
    %cst_38 = arith.constant dense<0.000000e+00> : vector<1x8x8xf32>
    %82 = tpu.matmul %81, %68, %cst_38 {dimension_numbers = #tpu.dot_dimension_numbers<[2], [1], [1], [2], [0, 0, 0, 1, 1, 2], [0], [0]>} : vector<1x8x8xf32>, vector<1x8x8xf32>, vector<1x8x8xf32> -> vector<1x8x8xf32>
    "tpu.trace_stop"() : () -> ()
    %83 = vector.shape_cast %82 : vector<1x8x8xf32> to vector<8x8xf32>
    %c8 = arith.constant 8 : index
    %c0_39 = arith.constant 0 : index
    %84 = vector.load %arg10[%c8, %c0_39] : memref<32x32xf32, #tpu.memory_space<vmem>>, vector<8x32xf32>
    %cst_40 = arith.constant dense<0.000000e+00> : vector<8x32xf32>
    %85 = tpu.matmul %83, %84, %cst_40 {dimension_numbers = #tpu.dot_dimension_numbers<[1], [0], [0], [1], [0, 0, 1, 1], [], []>} : vector<8x8xf32>, vector<8x32xf32>, vector<8x32xf32> -> vector<8x32xf32>
    %86 = arith.addf %65, %85 : vector<8x32xf32>
    %87 = vector.extract_strided_slice %41 {offsets = [0, 0, 16], sizes = [1, 8, 8], strides = [1, 1, 1]} : vector<1x8x32xf32> to vector<1x8x8xf32>
    %88 = vector.extract_strided_slice %42 {offsets = [0, 0, 16], sizes = [1, 8, 8], strides = [1, 1, 1]} : vector<1x8x32xf32> to vector<1x8x8xf32>
    %89 = vector.extract_strided_slice %43 {offsets = [0, 0, 16], sizes = [1, 8, 8], strides = [1, 1, 1]} : vector<1x8x32xf32> to vector<1x8x8xf32>
    "tpu.trace_start"() <{level = 10 : i32, message = "bqd,bkd->bqk"}> : () -> ()
    %cst_41 = arith.constant dense<0.000000e+00> : vector<1x8x8xf32>
    %90 = tpu.matmul %87, %88, %cst_41 {dimension_numbers = #tpu.dot_dimension_numbers<[2], [2], [1], [1], [0, 0, 0, 1, 1, 1], [0], [0]>} : vector<1x8x8xf32>, vector<1x8x8xf32>, vector<1x8x8xf32> -> vector<1x8x8xf32>
    "tpu.trace_stop"() : () -> ()
    %cst_42 = arith.constant 0.353553385 : f32
    %91 = vector.broadcast %cst_42 : f32 to vector<1x8x8xf32>
    %92 = arith.mulf %90, %91 : vector<1x8x8xf32>
    %cst_43 = arith.constant dense<0xFF800000> : vector<1x8xf32>
    %93 = vector.multi_reduction <maximumf>, %92, %cst_43 [2] : vector<1x8x8xf32> to vector<1x8xf32>
    %94 = vector.shape_cast %93 : vector<1x8xf32> to vector<1x8x1xf32>
    %95 = vector.broadcast %94 : vector<1x8x1xf32> to vector<1x8x8xf32>
    %96 = arith.subf %92, %95 : vector<1x8x8xf32>
    %97 = math.exp %96 : vector<1x8x8xf32>
    %cst_44 = arith.constant dense<0.000000e+00> : vector<1x8xf32>
    %98 = vector.multi_reduction <add>, %97, %cst_44 [2] : vector<1x8x8xf32> to vector<1x8xf32>
    %99 = vector.shape_cast %98 : vector<1x8xf32> to vector<1x8x1xf32>
    %100 = tpu.reciprocal %99 : vector<1x8x1xf32> -> vector<1x8x1xf32>
    %101 = vector.broadcast %100 : vector<1x8x1xf32> to vector<1x8x8xf32>
    %102 = arith.mulf %97, %101 : vector<1x8x8xf32>
    "tpu.trace_start"() <{level = 10 : i32, message = "bqk,bkd->bqd"}> : () -> ()
    %cst_45 = arith.constant dense<0.000000e+00> : vector<1x8x8xf32>
    %103 = tpu.matmul %102, %89, %cst_45 {dimension_numbers = #tpu.dot_dimension_numbers<[2], [1], [1], [2], [0, 0, 0, 1, 1, 2], [0], [0]>} : vector<1x8x8xf32>, vector<1x8x8xf32>, vector<1x8x8xf32> -> vector<1x8x8xf32>
    "tpu.trace_stop"() : () -> ()
    %104 = vector.shape_cast %103 : vector<1x8x8xf32> to vector<8x8xf32>
    %c16 = arith.constant 16 : index
    %c0_46 = arith.constant 0 : index
    %105 = vector.load %arg10[%c16, %c0_46] : memref<32x32xf32, #tpu.memory_space<vmem>>, vector<8x32xf32>
    %cst_47 = arith.constant dense<0.000000e+00> : vector<8x32xf32>
    %106 = tpu.matmul %104, %105, %cst_47 {dimension_numbers = #tpu.dot_dimension_numbers<[1], [0], [0], [1], [0, 0, 1, 1], [], []>} : vector<8x8xf32>, vector<8x32xf32>, vector<8x32xf32> -> vector<8x32xf32>
    %107 = arith.addf %86, %106 : vector<8x32xf32>
    %108 = vector.extract_strided_slice %41 {offsets = [0, 0, 24], sizes = [1, 8, 8], strides = [1, 1, 1]} : vector<1x8x32xf32> to vector<1x8x8xf32>
    %109 = vector.extract_strided_slice %42 {offsets = [0, 0, 24], sizes = [1, 8, 8], strides = [1, 1, 1]} : vector<1x8x32xf32> to vector<1x8x8xf32>
    %110 = vector.extract_strided_slice %43 {offsets = [0, 0, 24], sizes = [1, 8, 8], strides = [1, 1, 1]} : vector<1x8x32xf32> to vector<1x8x8xf32>
    "tpu.trace_start"() <{level = 10 : i32, message = "bqd,bkd->bqk"}> : () -> ()
    %cst_48 = arith.constant dense<0.000000e+00> : vector<1x8x8xf32>
    %111 = tpu.matmul %108, %109, %cst_48 {dimension_numbers = #tpu.dot_dimension_numbers<[2], [2], [1], [1], [0, 0, 0, 1, 1, 1], [0], [0]>} : vector<1x8x8xf32>, vector<1x8x8xf32>, vector<1x8x8xf32> -> vector<1x8x8xf32>
    "tpu.trace_stop"() : () -> ()
    %cst_49 = arith.constant 0.353553385 : f32
    %112 = vector.broadcast %cst_49 : f32 to vector<1x8x8xf32>
    %113 = arith.mulf %111, %112 : vector<1x8x8xf32>
    %cst_50 = arith.constant dense<0xFF800000> : vector<1x8xf32>
    %114 = vector.multi_reduction <maximumf>, %113, %cst_50 [2] : vector<1x8x8xf32> to vector<1x8xf32>
    %115 = vector.shape_cast %114 : vector<1x8xf32> to vector<1x8x1xf32>
    %116 = vector.broadcast %115 : vector<1x8x1xf32> to vector<1x8x8xf32>
    %117 = arith.subf %113, %116 : vector<1x8x8xf32>
    %118 = math.exp %117 : vector<1x8x8xf32>
    %cst_51 = arith.constant dense<0.000000e+00> : vector<1x8xf32>
    %119 = vector.multi_reduction <add>, %118, %cst_51 [2] : vector<1x8x8xf32> to vector<1x8xf32>
    %120 = vector.shape_cast %119 : vector<1x8xf32> to vector<1x8x1xf32>
    %121 = tpu.reciprocal %120 : vector<1x8x1xf32> -> vector<1x8x1xf32>
    %122 = vector.broadcast %121 : vector<1x8x1xf32> to vector<1x8x8xf32>
    %123 = arith.mulf %118, %122 : vector<1x8x8xf32>
    "tpu.trace_start"() <{level = 10 : i32, message = "bqk,bkd->bqd"}> : () -> ()
    %cst_52 = arith.constant dense<0.000000e+00> : vector<1x8x8xf32>
    %124 = tpu.matmul %123, %110, %cst_52 {dimension_numbers = #tpu.dot_dimension_numbers<[2], [1], [1], [2], [0, 0, 0, 1, 1, 2], [0], [0]>} : vector<1x8x8xf32>, vector<1x8x8xf32>, vector<1x8x8xf32> -> vector<1x8x8xf32>
    "tpu.trace_stop"() : () -> ()
    %125 = vector.shape_cast %124 : vector<1x8x8xf32> to vector<8x8xf32>
    %c24 = arith.constant 24 : index
    %c0_53 = arith.constant 0 : index
    %126 = vector.load %arg10[%c24, %c0_53] : memref<32x32xf32, #tpu.memory_space<vmem>>, vector<8x32xf32>
    %cst_54 = arith.constant dense<0.000000e+00> : vector<8x32xf32>
    %127 = tpu.matmul %125, %126, %cst_54 {dimension_numbers = #tpu.dot_dimension_numbers<[1], [0], [0], [1], [0, 0, 1, 1], [], []>} : vector<8x8xf32>, vector<8x32xf32>, vector<8x32xf32> -> vector<8x32xf32>
    %128 = arith.addf %107, %127 : vector<8x32xf32>
    %129 = vector.shape_cast %0 : vector<1x8x32xf32> to vector<8x32xf32>
    %130 = arith.addf %129, %128 : vector<8x32xf32>
    %c0_55 = arith.constant 0 : index
    %c0_56 = arith.constant 0 : index
    %131 = vector.load %arg11[%c0_55, %c0_56] : memref<1x32xf32, #tpu.memory_space<vmem>>, vector<1x32xf32>
    %132 = vector.broadcast %131 : vector<1x32xf32> to vector<8x32xf32>
    %133 = arith.addf %130, %132 : vector<8x32xf32>
    %c0_57 = arith.constant 0 : index
    %c0_58 = arith.constant 0 : index
    %134 = vector.load %arg12[%c0_57, %c0_58] : memref<1x32xf32, #tpu.memory_space<vmem>>, vector<1x32xf32>
    %c0_59 = arith.constant 0 : index
    %c0_60 = arith.constant 0 : index
    %135 = vector.load %arg13[%c0_59, %c0_60] : memref<1x32xf32, #tpu.memory_space<vmem>>, vector<1x32xf32>
    %cst_61 = arith.constant dense<0.000000e+00> : vector<8xf32>
    %136 = vector.multi_reduction <add>, %133, %cst_61 [1] : vector<8x32xf32> to vector<8xf32>
    %137 = vector.shape_cast %136 : vector<8xf32> to vector<8x1xf32>
    %cst_62 = arith.constant 3.200000e+01 : f32
    %138 = vector.broadcast %cst_62 : f32 to vector<8x1xf32>
    %139 = arith.divf %137, %138 : vector<8x1xf32>
    %140 = vector.broadcast %139 : vector<8x1xf32> to vector<8x32xf32>
    %141 = arith.subf %133, %140 : vector<8x32xf32>
    %142 = arith.mulf %141, %141 : vector<8x32xf32>
    %cst_63 = arith.constant dense<0.000000e+00> : vector<8xf32>
    %143 = vector.multi_reduction <add>, %142, %cst_63 [1] : vector<8x32xf32> to vector<8xf32>
    %144 = vector.shape_cast %143 : vector<8xf32> to vector<8x1xf32>
    %cst_64 = arith.constant 3.200000e+01 : f32
    %145 = vector.broadcast %cst_64 : f32 to vector<8x1xf32>
    %146 = arith.divf %144, %145 : vector<8x1xf32>
    %cst_65 = arith.constant 9.99999974E-6 : f32
    %147 = vector.broadcast %cst_65 : f32 to vector<8x1xf32>
    %148 = arith.addf %146, %147 : vector<8x1xf32>
    %149 = math.rsqrt %148 : vector<8x1xf32>
    %150 = vector.broadcast %149 : vector<8x1xf32> to vector<8x32xf32>
    %151 = arith.mulf %141, %150 : vector<8x32xf32>
    %152 = vector.broadcast %134 : vector<1x32xf32> to vector<8x32xf32>
    %153 = arith.mulf %151, %152 : vector<8x32xf32>
    %154 = vector.broadcast %135 : vector<1x32xf32> to vector<8x32xf32>
    %155 = arith.addf %153, %154 : vector<8x32xf32>
    %c0_66 = arith.constant 0 : index
    %c0_67 = arith.constant 0 : index
    %156 = vector.load %arg14[%c0_66, %c0_67] : memref<32x64xf32, #tpu.memory_space<vmem>>, vector<32x64xf32>
    %cst_68 = arith.constant dense<0.000000e+00> : vector<8x64xf32>
    %157 = tpu.matmul %155, %156, %cst_68 {dimension_numbers = #tpu.dot_dimension_numbers<[1], [0], [0], [1], [0, 0, 1, 1], [], []>} : vector<8x32xf32>, vector<32x64xf32>, vector<8x64xf32> -> vector<8x64xf32>
    %c0_69 = arith.constant 0 : index
    %c0_70 = arith.constant 0 : index
    %158 = vector.load %arg15[%c0_69, %c0_70] : memref<1x64xf32, #tpu.memory_space<vmem>>, vector<1x64xf32>
    %159 = vector.broadcast %158 : vector<1x64xf32> to vector<8x64xf32>
    %160 = arith.addf %157, %159 : vector<8x64xf32>
    %cst_71 = arith.constant 5.000000e-01 : f32
    %161 = vector.broadcast %cst_71 : f32 to vector<8x64xf32>
    %162 = arith.mulf %161, %160 : vector<8x64xf32>
    %cst_72 = arith.constant 4.471500e-02 : f32
    %163 = vector.broadcast %cst_72 : f32 to vector<8x64xf32>
    %164 = arith.mulf %163, %160 : vector<8x64xf32>
    %165 = arith.mulf %164, %160 : vector<8x64xf32>
    %166 = arith.mulf %165, %160 : vector<8x64xf32>
    %167 = arith.addf %160, %166 : vector<8x64xf32>
    %cst_73 = arith.constant 0.797884583 : f32
    %168 = vector.broadcast %cst_73 : f32 to vector<8x64xf32>
    %169 = arith.mulf %168, %167 : vector<8x64xf32>
    %170 = math.tanh %169 : vector<8x64xf32>
    %cst_74 = arith.constant 1.000000e+00 : f32
    %171 = vector.broadcast %cst_74 : f32 to vector<8x64xf32>
    %172 = arith.addf %171, %170 : vector<8x64xf32>
    %173 = arith.mulf %162, %172 : vector<8x64xf32>
    %c0_75 = arith.constant 0 : index
    %c0_76 = arith.constant 0 : index
    %174 = vector.load %arg16[%c0_75, %c0_76] : memref<64x32xf32, #tpu.memory_space<vmem>>, vector<64x32xf32>
    %cst_77 = arith.constant dense<0.000000e+00> : vector<8x32xf32>
    %175 = tpu.matmul %173, %174, %cst_77 {dimension_numbers = #tpu.dot_dimension_numbers<[1], [0], [0], [1], [0, 0, 1, 1], [], []>} : vector<8x64xf32>, vector<64x32xf32>, vector<8x32xf32> -> vector<8x32xf32>
    %c0_78 = arith.constant 0 : index
    %c0_79 = arith.constant 0 : index
    %176 = vector.load %arg17[%c0_78, %c0_79] : memref<1x32xf32, #tpu.memory_space<vmem>>, vector<1x32xf32>
    %177 = vector.broadcast %176 : vector<1x32xf32> to vector<8x32xf32>
    %178 = arith.addf %175, %177 : vector<8x32xf32>
    %179 = arith.addf %133, %178 : vector<8x32xf32>
    %180 = vector.shape_cast %179 : vector<8x32xf32> to vector<1x8x32xf32>
    %c0_80 = arith.constant 0 : index
    %c0_81 = arith.constant 0 : index
    %c0_82 = arith.constant 0 : index
    %181 = vector.load %arg18[%c0_80, %c0_81, %c0_82] : memref<1x8x32xf32, #tpu.memory_space<vmem>>, vector<1x8x32xf32>
    tpu.vector_store %arg18[%c0_80, %c0_81, %c0_82], %180 {strides = array<i32>} : memref<1x8x32xf32, #tpu.memory_space<vmem>>, vector<1x8x32xf32>,
    return
  }
  func.func @transform_0(%arg0: i32) -> (i32, i32, i32) {
    %c0_i32 = arith.constant 0 : i32
    %c0_i32_0 = arith.constant 0 : i32
    %c0_i32_1 = arith.constant 0 : i32
    return %arg0, %c0_i32, %c0_i32_0 : i32, i32, i32
  }
  func.func @transform_1(%arg0: i32) -> (i32, i32) {
    %c0_i32 = arith.constant 0 : i32
    %c0_i32_0 = arith.constant 0 : i32
    %c0_i32_1 = arith.constant 0 : i32
    return %c0_i32, %c0_i32_0 : i32, i32
  }
  func.func @transform_2(%arg0: i32) -> (i32, i32) {
    %c0_i32 = arith.constant 0 : i32
    %c0_i32_0 = arith.constant 0 : i32
    %c0_i32_1 = arith.constant 0 : i32
    return %c0_i32, %c0_i32_0 : i32, i32
  }
  func.func @transform_3(%arg0: i32) -> (i32, i32) {
    %c0_i32 = arith.constant 0 : i32
    %c0_i32_0 = arith.constant 0 : i32
    %c0_i32_1 = arith.constant 0 : i32
    return %c0_i32, %c0_i32_0 : i32, i32
  }
  func.func @transform_4(%arg0: i32) -> (i32, i32) {
    %c0_i32 = arith.constant 0 : i32
    %c0_i32_0 = arith.constant 0 : i32
    %c0_i32_1 = arith.constant 0 : i32
    return %c0_i32, %c0_i32_0 : i32, i32
  }
  func.func @transform_5(%arg0: i32) -> (i32, i32) {
    %c0_i32 = arith.constant 0 : i32
    %c0_i32_0 = arith.constant 0 : i32
    %c0_i32_1 = arith.constant 0 : i32
    return %c0_i32, %c0_i32_0 : i32, i32
  }
  func.func @transform_6(%arg0: i32) -> (i32, i32) {
    %c0_i32 = arith.constant 0 : i32
    %c0_i32_0 = arith.constant 0 : i32
    %c0_i32_1 = arith.constant 0 : i32
    return %c0_i32, %c0_i32_0 : i32, i32
  }
  func.func @transform_7(%arg0: i32) -> (i32, i32) {
    %c0_i32 = arith.constant 0 : i32
    %c0_i32_0 = arith.constant 0 : i32
    %c0_i32_1 = arith.constant 0 : i32
    return %c0_i32, %c0_i32_0 : i32, i32
  }
  func.func @transform_8(%arg0: i32) -> (i32, i32) {
    %c0_i32 = arith.constant 0 : i32
    %c0_i32_0 = arith.constant 0 : i32
    %c0_i32_1 = arith.constant 0 : i32
    return %c0_i32, %c0_i32_0 : i32, i32
  }
  func.func @transform_9(%arg0: i32) -> (i32, i32) {
    %c0_i32 = arith.constant 0 : i32
    %c0_i32_0 = arith.constant 0 : i32
    %c0_i32_1 = arith.constant 0 : i32
    return %c0_i32, %c0_i32_0 : i32, i32
  }
  func.func @transform_10(%arg0: i32) -> (i32, i32) {
    %c0_i32 = arith.constant 0 : i32
    %c0_i32_0 = arith.constant 0 : i32
    %c0_i32_1 = arith.constant 0 : i32
    return %c0_i32, %c0_i32_0 : i32, i32
  }
  func.func @transform_11(%arg0: i32) -> (i32, i32) {
    %c0_i32 = arith.constant 0 : i32
    %c0_i32_0 = arith.constant 0 : i32
    %c0_i32_1 = arith.constant 0 : i32
    return %c0_i32, %c0_i32_0 : i32, i32
  }
  func.func @transform_12(%arg0: i32) -> (i32, i32) {
    %c0_i32 = arith.constant 0 : i32
    %c0_i32_0 = arith.constant 0 : i32
    %c0_i32_1 = arith.constant 0 : i32
    return %c0_i32, %c0_i32_0 : i32, i32
  }
  func.func @transform_13(%arg0: i32) -> (i32, i32) {
    %c0_i32 = arith.constant 0 : i32
    %c0_i32_0 = arith.constant 0 : i32
    %c0_i32_1 = arith.constant 0 : i32
    return %c0_i32, %c0_i32_0 : i32, i32
  }
  func.func @transform_14(%arg0: i32) -> (i32, i32) {
    %c0_i32 = arith.constant 0 : i32
    %c0_i32_0 = arith.constant 0 : i32
    %c0_i32_1 = arith.constant 0 : i32
    return %c0_i32, %c0_i32_0 : i32, i32
  }
  func.func @transform_15(%arg0: i32) -> (i32, i32) {
    %c0_i32 = arith.constant 0 : i32
    %c0_i32_0 = arith.constant 0 : i32
    %c0_i32_1 = arith.constant 0 : i32
    return %c0_i32, %c0_i32_0 : i32, i32
  }
  func.func @transform_16(%arg0: i32) -> (i32, i32) {
    %c0_i32 = arith.constant 0 : i32
    %c0_i32_0 = arith.constant 0 : i32
    %c0_i32_1 = arith.constant 0 : i32
    return %c0_i32, %c0_i32_0 : i32, i32
  }
  func.func @transform_17(%arg0: i32) -> (i32, i32, i32) {
    %c0_i32 = arith.constant 0 : i32
    %c0_i32_0 = arith.constant 0 : i32
    %c0_i32_1 = arith.constant 0 : i32
    return %arg0, %c0_i32, %c0_i32_0 : i32, i32, i32
  }
}

</mosaic_0001>

<bundles_post_ra>
// kernel: tpu_custom_call.1
= control target key start
LH: loop header
LB: loop body
LE: loop exit
PB: predicated region body
PF: predicated region fallthrough
CT: control target
= control target key end

     0   :  { %s2159_s0 = inlined_call_operand.hbm [shape: f32[2,8,32], index: 0, kind: input, shape index: {}]   ;;  %s2160_s1 = inlined_call_operand.hbm [shape: f32[1,32], index: 1, kind: input, shape index: {}]   ;;  %s2161_s2 = inlined_call_operand.vmem [shape: f32[1,32], index: 2, kind: input, shape index: {}]   ;;  %s2162_s3 = inlined_call_operand.vmem [shape: f32[32,32], index: 3, kind: input, shape index: {}]   ;;  %s2163_s4 = inlined_call_operand.vmem [shape: f32[1,32], index: 4, kind: input, shape index: {}]   ;;  %s2164_s5 = inlined_call_operand.vmem [shape: f32[32,32], index: 5, kind: input, shape index: {}]   ;;  %s2165_s6 = inlined_call_operand.vmem [shape: f32[1,32], index: 6, kind: input, shape index: {}]   ;;  %s2166_s7 = inlined_call_operand.vmem [shape: f32[32,32], index: 7, kind: input, shape index: {}]   ;;  %s2167_s8 = inlined_call_operand.vmem [shape: f32[1,32], index: 8, kind: input, shape index: {}]   ;;  %s2168_s9 = inlined_call_operand.hbm [shape: f32[32,32], index: 9, kind: input, shape index: {}]   ;;  %s2169_s10 = inlined_call_operand.vmem [shape: f32[1,32], index: 10, kind: input, shape index: {}]   ;;  %s2170_s11 = inlined_call_operand.vmem [shape: f32[1,32], index: 11, kind: input, shape index: {}]   ;;  %s2171_s12 = inlined_call_operand.vmem [shape: f32[1,32], index: 12, kind: input, shape index: {}]   ;;  %s2172_s13 = inlined_call_operand.hbm [shape: f32[32,64], index: 13, kind: input, shape index: {}]   ;;  %s2173_s14 = inlined_call_operand.vmem [shape: f32[1,64], index: 14, kind: input, shape index: {}]   ;;  %s2174_s15 = inlined_call_operand.vmem [shape: f32[64,32], index: 15, kind: input, shape index: {}]   ;;  %s2175_s16 = inlined_call_operand.vmem [shape: f32[1,32], index: 16, kind: input, shape index: {}]   ;;  %s2176_s17 = inlined_call_operand.hbm [shape: f32[2,8,32], index: 17, kind: output, shape index: {}]  }
   0x1   :  { %2186 = sst [smem:[#allocation21_spill]] %s2159_s0 }
   0x2   :  { %2187 = sst [smem:[#allocation22_spill]] %s2160_s1 }
   0x3   :  { %2188 = sst [smem:[#allocation23_spill]] %s2168_s9 }
   0x4   :  { %2189 = sst [smem:[#allocation24_spill]] %s2172_s13 }
   0x5   :  { %2190 = sst [smem:[#allocation25_spill]] %s2173_s14 }
   0x6   :  { %2191 = sst [smem:[#allocation26_spill]] %s2175_s16 }
   0x7   :  { %2192 = sst [smem:[#allocation27_spill]] %s2176_s17 }
   0x8   :  { %22 = vsyncpa [#allocation3], 0 }
   0x9   :  { %24 = vsyncpa [#allocation3 + $0x1], 0 }
   0xa   :  { %25 = vsyncpa [#allocation6], 0 }
   0xb   :  { %26 = vsyncpa [#allocation9], 0 }
   0xc   :  { %27 = vsyncpa [#allocation4], 0 }
   0xd   :  { %29 = vsyncpa [#allocation4 + $0x1], 0  ;;  %s1835_s24 = smov 0   ;;  %s1837_s25 = smov 0  }
   0xe   :  { %s1839_s26 = smov 0   ;;  %s1841_s27 = smov 0  }
   0xf LB: > { %2193 = sst [smem:[#allocation15_spill]] %s1722_s24  ;;  %s1856_s28 = sadd.s32 4294967295, %s1734_s27   ;;  %s1734_s27 = sphi %s1841_s27, %s2217_s27   ;;  %s1730_s26 = sphi %s1839_s26, %s2222_s26   ;;  %s1726_s25 = sphi %s1837_s25, %s2221_s25   ;;  %s1722_s24 = sphi %s1835_s24, %s2220_s24  }
  0x10   : > { %2194 = sst [smem:[#allocation16_spill]] %s1730_s26  ;;  %s1384_s29 = sadd.s32 4294967294, %s1734_s27  }
  0x11   : > { %p55_p0 = scmp.ne.s32.totalorder %s1726_s25, %s1722_s24  ;;  %p56_p1 = scmp.eq.s32.totalorder %s1856_s28, 0 }
  0x12   : > { %p415_p2 = scmp.eq.s32.totalorder %s1856_s28, 1  ;;  %p421_p3 = scmp.eq.s32.totalorder %s1384_s29, 1 }
  0x13   : > { %p1865_p4 = por %p56_p1, %p55_p0  ;;  %p1385_p5 = scmp.ge.s32.totalorder %s1734_s27, 1 }
  0x14   : > { %p1870_p6 = por %p421_p3, %p55_p0  ;;  %p428_p7 = scmp.lt.s32.totalorder %s1734_s27, 3 }
  0x15   : > { %s2198_s1 = sld [smem:[#allocation22_spill]]  ;;  %s1736_s22 = smov [#allocation5]  }
  0x16   : > { %s2196_s30 = scalar_select %p1870_p6, 1, 0 }
  0x17   : > { %p1878_p8 = pnand %p1385_p5, %p428_p7  ;;  %s442_s23 = sshll.u32 %s1736_s22, 4  ;;  %s443_s23 = int_to_ptr.vmem [resolvable:$true] %s442_s23 }
  0x18   : > { %2197 = sst [smem:[#allocation17_spill]] %s2196_s30  ;;  %s1737_s19 = smov [#allocation7]  }
  0x19   : > { %p1439_p10 = pneg %p1878_p8  ;;  %s2200_s9 = sld [smem:[#allocation23_spill]] }
  0x1a   : > { %s1738_s24 = smov 128   ;;  %s1739_s22 = smov 8  }
  0x1b   : > { %s440_s20 = sshll.u32 %s2198_s1, 4  ;;  %p1890_p11 = pnand %p1439_p10, %p56_p1  ;;  %s441_s20 = int_to_ptr.hbm [resolvable:$true] %s440_s20 }
  0x1c   : > { %s474_s1 = sshll.u32 %s1737_s19, 4  ;;  %s2202_s13 = sld [smem:[#allocation24_spill]]  ;;  %s475_s1 = int_to_ptr.vmem [resolvable:$true] %s474_s1 }
  0x1d   : > { %1442 = dma.hbm_to_vmem [thread:$0]  (!%p1890_p11), %s441_s20, 16, %s443_s23, [#allocation6]  }
  0x1e   : > { %s1740_s19 = smov [#allocation8]   ;;  %s1904_s20 = sadd.s32 1, %s1734_s27  }
  0x1f   : > { %s472_s30 = sshll.u32 %s2200_s9, 4  ;;  %s497_s16 = sshll.u32 %s1740_s19, 4  ;;  %s473_s30 = int_to_ptr.hbm [resolvable:$true] %s472_s30  ;;  %s498_s16 = int_to_ptr.vmem [resolvable:$true] %s497_s16 }
  0x20   : > { %1445 = dma.hbm_to_vmem [thread:$0]  (!%p1890_p11), %s473_s30, 512, %s475_s1, [#allocation6], %s1738_s24, %s1738_s24, %s1739_s22  }
  0x21   : > { %2203 = sst [smem:[#allocation18_spill]] %s1904_s20  ;;  %s39_s23 = ssub.s32 %s1734_s27, %s1904_s20 }
  0x22   : > { %s495_s17 = sshll.u32 %s2202_s13, 4  ;;  %s42_s14 = sadd.s32 1, %s1730_s26  ;;  %s496_s17 = int_to_ptr.hbm [resolvable:$true] %s495_s17 }
  0x23   : > { %1448 = dma.hbm_to_vmem [thread:$0]  (!%p1890_p11), %s496_s17, 512, %s498_s16, [#allocation9], %s1738_s24, %s1738_s24, %s1739_s22  }
  0x24   : > { %p40_p12 = scmp.eq.s32.totalorder %s39_s23, 0  ;;  %p49_p13 = scmp.ne.s32.totalorder %s1730_s26, %s1726_s25 }
  0x25   : > { %p50_p0 = scmp.eq.s32.totalorder %s1734_s27, 0  ;;  %p1460_p5 = scmp.lt.s32.totalorder %s1734_s27, 2 }
  0x26   : > { %s1913_s30 = scalar_select %p40_p12, %s1730_s26, %s42_s14  }
  0x27   : > { %p1917_p3 = por %p415_p2, %p49_p13  ;;  %s520_s1 = sand.u32 1, %s1730_s26  }
  0x28   : > { %2204 = sst [smem:[#allocation19_spill]] %s1913_s30  ;;  %s1391_s29 = sshll.u32 %s1734_s27, 3 }
  0x29   : > { %s2205_s9 = scalar_select %p1917_p3, 1, 0 }
  0x2a   : > { %p51_p7 = por %p50_p0, %p49_p13  ;;  %s1390_s16 = sshll.u32 %s520_s1, 3 }
  0x2b   : > { %2206 = sst [smem:[#allocation20_spill]] %s2205_s9  ;;  %s524_s23 = scalar_lea.vmem [#allocation2], %s1390_s16 }
  0x2c   : > { %s2207_s24 = sld [smem:[#allocation21_spill]]  ;;  %s532_s20 = sshll.u32 %s524_s23, 4  ;;  %s533_s20 = int_to_ptr.vmem [resolvable:$true] %s532_s20 }
  0x2d   : > { %p1927_p10 = pnand %p1460_p5, %p51_p7  ;;  %s521_s30 = scalar_lea.sflag [#allocation3], %s520_s1 }
  0x2f   : > { %p1634_p11 = pneg %p1927_p10 }
  0x32   : > { %s2208_s22 = smov %s2207_s24  ;;  %s528_s19 = scalar_lea.hbm %s2207_s24, %s1391_s29 }
  0x33   : > { %s530_s13 = sshll.u32 %s528_s19, 4  ;;  %s1637_s16 = scalar_lea.hbm %s2208_s22, 16  ;;  %s531_s13 = int_to_ptr.hbm [resolvable:$true] %s530_s13 }
  0x34   : > { %s1630_s9 = sshra.s32 %s531_s13, 4  ;;  %s1631_s9 = int_to_ptr.hbm [resolvable:$true] %s1630_s9 }
  0x35   : > { %s1632_s26 = scalar_lea.hbm %s1631_s9, 8  ;;  %p1638_p0 = scmp.lt.s32.totalorder %s1631_s9, %s2208_s22 }
  0x36   : > { %p1633_p2 = scmp.ne.s32.totalorder %s1631_s9, %s1632_s26  ;;  %p1639_p5 = scmp.lt.s32.totalorder %s1637_s16, %s1632_s26 }
  0x38   : > { %p1635_p12 = pnand %p1634_p11, %p1633_p2  ;;  %p1640_p7 = por %p1639_p5, %p1638_p0 }
  0x3a   : > { %p1636_p13 = pneg %p1635_p12 }
  0x3c   : > { %p1641_p9 = pnand %p1640_p7, %p1636_p13 }
  0x3e   : > { %1644 = shalt.err (!%p1641_p9)
}
  0x3f   : > { %1452 = dma.hbm_to_vmem [thread:$0]  (!%p1927_p10), %s531_s13, 128, %s533_s20, %s521_s30  }
  0x40   : > { %541 = sbr.rel (%p1878_p8) target bundleno = 2225 (0x8b1), region = 88  ;;  %s1944_s1 = sand.u32 (!%p1878_p8), 1, %s1726_s25  }
  0x41   : > { %s1393_s19 = sshll.u32 (!%p1878_p8), %s1944_s1, 3  ;;  %s544_s23 = scalar_lea.sflag (!%p1878_p8), [#allocation3], %s1944_s1 }
  0x42   : > { %s547_s26 = scalar_lea.vmem (!%p1878_p8), [#allocation2], %s1393_s19 }
  0x45   : > { %1705 = dma.done.wait (%p1865_p4), %s544_s23, 128  }
  0x46   : > { %1707 = vsyncadd (%p1865_p4), %s544_s23, 4294967168 }
  0x47   : > { %1709 = dma.done.wait (%p56_p1), [#allocation6], 528  }
  0x48   : > { %1711 = vsyncadd (%p56_p1), [#allocation6], 4294966768 }
  0x49   : > { %1713 = dma.done.wait (%p56_p1), [#allocation9], 512  }
  0x4a   : > { %1715 = vsyncadd (%p56_p1), [#allocation9], 4294966784  ;;  %vm617_vm0 = vcmask 261120   ;;  %v1962_v0 = vld [vmem:[%s547_s26] sm:$0xff]  ;;  %v1741_v2 = vmov 32.0   ;;  %v658_v14 = vld [vmem:[%s2162_s3 + $0x18] sm:$0xff] }
  0x4b   : > { %v618_v1 = vsel %vm617_vm0, %v1962_v0, 0.0  ;;  %1516 = vrcp.f32 %v1741_v2  ;;  %v689_v15 = vld [vmem:[%s2164_s5 + $0x18] sm:$0xff]  ;;  %678 = vmatpush.msra.mxu0 %v658_v14  ;;  %v657_v17 = vld [vmem:[%s2162_s3 + $0x10] sm:$0xff]  ;;  %v656_v20 = vld [vmem:[%s2162_s3 + $0x8] sm:$0xff]  ;;  %vm742_vm5 = vcmask 64512   ;;  %s1742_s21 = smov 112  }
  0x4c   : > { %619 = vadd.xlane.f32.xlu0 %v618_v1  ;;  %v717_v16 = vld [vmem:[%s2166_s7 + $0x18] sm:$0xff]  ;;  %706 = vmatpush.msra.mxu1 %v689_v15  ;;  %v688_v18 = vld [vmem:[%s2164_s5 + $0x10] sm:$0xff]  ;;  %v687_v21 = vld [vmem:[%s2164_s5 + $0x8] sm:$0xff]  ;;  %s1743_s20 = smov 120   ;;  %s1744_s14 = smov 104  }
  0x4d   : > { %v716_v19 = vld [vmem:[%s2166_s7 + $0x10] sm:$0xff]  ;;  %734 = vmatpush.msra.mxu2 %v717_v16  ;;  %679 = vmatpush.msra.mxu0 %v657_v17  ;;  %v715_v22 = vld [vmem:[%s2166_s7 + $0x8] sm:$0xff]  ;;  %v655_v23 = vld [vmem:[%s2162_s3] sm:$0xff]  ;;  %s1420_s30 = sshll.u32 %s1856_s28, 3  ;;  %s2211_s29 = sld [smem:[#allocation26_spill]] }
  0x4e   : > { %707 = vmatpush.msra.mxu1 %v688_v18  ;;  %v686_v24 = vld [vmem:[%s2164_s5] sm:$0xff]  ;;  %v1506_v35 = vld [vmem:[#allocation5] ss:$0 sm:$0xff]  ;;  %v817_v14 = vld [vmem:[#allocation7] sm:$0xff]  ;;  %s2212_s18 = sld [smem:[#allocation27_spill]]  ;;  %s613_s26 = scalar_lea.vmem [#allocation10], %s1393_s19 }
  0x4f   : > { %735 = vmatpush.msra.mxu2 %v716_v19  ;;  %680 = vmatpush.msra.mxu0 %v656_v20  ;;  %v714_v25 = vld [vmem:[%s2166_s7] sm:$0xff]  ;;  %s1282_s13 = sshll.u32 %s613_s26, 4  ;;  %s1270_s28 = scalar_lea.sflag [#allocation4], %s1944_s1  ;;  %s1283_s13 = int_to_ptr.vmem [resolvable:$true] %s1282_s13 }
  0x50   : > { %708 = vmatpush.msra.mxu1 %v687_v21  ;;  %v1507_v38 = vld [vmem:[%s2161_s2] ss:$0 sm:$0xff] }
  0x51   : > { %v1517_v3 = vpop.eup %1516  ;;  %736 = vmatpush.msra.mxu2 %v715_v22  ;;  %681 = vmatpush.msra.mxu0 %v655_v23  ;;  %v1509_v41 = vld [vmem:[%s2165_s6] ss:$0 sm:$0xff] }
  0x52   : > { %v622_v4 = vmul.f32 32.0, %v1517_v3  ;;  %vm626_vm1 = vweird.f32 %v1517_v3  ;;  %709 = vmatpush.msra.mxu1 %v686_v24  ;;  %v1508_v43 = vld [vmem:[%s2163_s4] ss:$0 sm:$0xff] }
  0x53   : > { %737 = vmatpush.msra.mxu2 %v714_v25  ;;  %v1510_v46 = vld [vmem:[%s2167_s8] ss:$0 sm:$0xff] }
  0x54   : > { %v623_v5 = vsub.f32 1.0, %v622_v4  ;;  %s1280_s23 = scalar_lea.hbm %s2212_s18, %s1420_s30  ;;  %s1680_s19 = scalar_lea.hbm %s2212_s18, 16 }
  0x55   : > { %s1284_s0 = sshll.u32 %s1280_s23, 4  ;;  %s1285_s0 = int_to_ptr.hbm [resolvable:$true] %s1284_s0 }
  0x56   : > { %v624_v6 = vmul.f32 %v1517_v3, %v623_v5 }
  0x58   : > { %v625_v7 = vadd.f32 %v1517_v3, %v624_v6 }
  0x5a   : > { %v1966_v8 = vsel %vm626_vm1, %v1517_v3, %v625_v7 }
  0xbf   : > { %v620_v9 = vpop.xlane.xlu0 %619 }
  0xc0   : > { %v628_v10 = vmul.f32 %v1966_v8, %v620_v9 }
  0xc2   : > { %v629_v11 = vsub.f32 %v1962_v0, %v628_v10 }
  0xc4   : > { %v630_v12 = vmul.f32 %v629_v11, %v629_v11 }
  0xc6   : > { %v631_v13 = vsel %vm617_vm0, %v630_v12, 0.0 }
  0xc7   : > { %632 = vadd.xlane.f32.xlu0 %v631_v13 }
 0x13a   : > { %v633_v26 = vpop.xlane.xlu0 %632 }
 0x13b   : > { %v634_v27 = vmul.f32 %v633_v26, %v1966_v8 }
 0x13d   : > { %v635_v28 = vadd.f32 1e-05, %v634_v27 }
 0x13f   : > { %1518 = vrsqrt.f32 %v635_v28  ;;  %vm642_vm3 = vweird.f32 %v635_v28 }
 0x145   : > { %v1519_v29 = vpop.eup %1518 }
 0x146   : > { %v637_v30 = vmul.f32 %v1519_v29, %v635_v28  ;;  %vm643_vm2 = vweird.f32 %v1519_v29 }
 0x147   : > { %vm644_vm4 = vmor %vm642_vm3, %vm643_vm2 }
 0x148   : > { %v638_v31 = vmul.f32 %v1519_v29, %v637_v30 }
 0x14a   : > { %v639_v32 = vmul.f32 0.5, %v638_v31 }
 0x14c   : > { %v640_v33 = vsub.f32 1.5, %v639_v32 }
 0x14e   : > { %v641_v34 = vmul.f32 %v1519_v29, %v640_v33 }
 0x150   : > { %v645_v36 = vsel %vm644_vm4, %v1519_v29, %v641_v34 }
 0x151   : > { %v646_v37 = vmul.f32 %v645_v36, %v629_v11 }
 0x153   : > { %v650_v39 = vmul.f32 %v1506_v35, %v646_v37 }
 0x155   : > { %v654_v40 = vadd.f32 %v1507_v38, %v650_v39 }
 0x157   : > { %1398 = vmatmul.msk.f32.vlgmr.msra.gmra.mxu0 %vm617_vm0, %v654_v40  ;;  %1399 = vmatmul.msk.f32.vlgmr.msra.gmra.mxu1 %vm617_vm0, %v654_v40 }
 0x158   : > { %1400 = vmatmul.msk.f32.vlgmr.msra.gmra.mxu2 %vm617_vm0, %v654_v40 }
 0x1d4   : > { %v711_v42 = vpop.f32.mrf.mxu1  ;;  %v683_v45 = vpop.f32.mrf.mxu0 }
 0x1d5   : > { %v712_v44 = vadd.f32 %v1509_v41, %v711_v42  ;;  %v684_v47 = vadd.f32 %v1508_v43, %v683_v45 }
 0x1d7   : > { %947 = vrot.lane.b32.xlu0 %v712_v44, %s1742_s21  ;;  %820 = vrot.lane.b32.xlu2 %v712_v44, %s1743_s20 }
 0x1d8   : > { %1401 = vmatpush.xpose.msk.msrb.mxu0 %vm742_vm5, %v712_v44 }
 0x1db   : > { %v739_v48 = vpop.f32.mrf.mxu2  ;;  %1402 = vmatmul.msk.f32.vlgmr.msrb.gmra.mxu0 %vm742_vm5, %v684_v47 }
 0x1dc   : > { %v2027_v49 = vadd.f32 %v1510_v46, %v739_v48 }
 0x1de   : > { %812 = vmatpush.msra.mxu3 %v2027_v49 }
 0x1df   : > { %818 = vrot.lane.b32.xlu2 %v684_v47, %s1743_s20 }
 0x1e0   : > { %940 = vmatpush.msrb.mxu3 %v817_v14 }
 0x1e7   : > { %945 = vrot.lane.b32.xlu2 %v684_v47, %s1742_s21 }
 0x1ef   : > { %1049 = vrot.lane.b32.xlu2 %v684_v47, %s1744_s14 }
 0x231   : > { %v821_v50 = vpop.permute.xlu2 %820 }
 0x232   : > { %1404 = vmatpush.xpose.msk.msra.mxu0 %vm742_vm5, %v821_v50 }
 0x239   : > { %v819_v51 = vpop.permute.xlu2 %818 }
 0x23a   : > { %1405 = vmatmul.msk.f32.vlgmr.msra.gmra.mxu0 %vm742_vm5, %v819_v51 }
 0x241   : > { %v946_v53 = vpop.permute.xlu2 %945 }
 0x249   : > { %v948_v52 = vpop.permute.xlu0 %947  ;;  %v1050_v5 = vpop.permute.xlu2 %1049 }
 0x24a   : > { %1409 = vmatpush.xpose.msk.msrb.mxu0 %vm742_vm5, %v948_v52 }
 0x24d   : > { %1410 = vmatmul.msk.f32.vlgmr.msrb.gmra.mxu0 %vm742_vm5, %v946_v53 }
 0x258   : > { %v766_v54 = vpop.f32.mrf.mxu0 }
 0x259   : > { %v769_v55 = vmul.f32 0.35355338, %v766_v54 }
 0x25b   : > { %v770_v56 = vsel %vm742_vm5, %v769_v55, -inf }
 0x25c   : > { %771 = vmax.xlane.f32.xlu1 %v770_v56 }
 0x2b7   : > { %v843_v57 = vpop.f32.mrf.mxu0 }
 0x2b8   : > { %v846_v58 = vmul.f32 0.35355338, %v843_v57 }
 0x2ba   : > { %v847_v59 = vsel %vm742_vm5, %v846_v58, -inf }
 0x2bb   : > { %848 = vmax.xlane.f32.xlu2 %v847_v59 }
 0x2ca   : > { %v970_v60 = vpop.f32.mrf.mxu0 }
 0x2cb   : > { %v973_v61 = vmul.f32 0.35355338, %v970_v60 }
 0x2cd   : > { %v974_v62 = vsel %vm742_vm5, %v973_v61, -inf }
 0x2ce   : > { %975 = vmax.xlane.f32.xlu0 %v974_v62 }
 0x2cf   : > { %v772_v63 = vpop.xlane.xlu1 %771 }
 0x2d0   : > { %v773_v1 = vsub.f32 %v769_v55, %v772_v63 }
 0x2d2   : > { %v774_v2 = vmul.f32 1.442695, %v773_v1 }
 0x2d4   : > { %1520 = vpow2.f32 %v774_v2 }
 0x2da   : > { %v1521_v3 = vpop.eup %1520 }
 0x2db   : > { %v776_v4 = vsel %vm742_vm5, %v1521_v3, 0.0 }
 0x2dc   : > { %777 = vadd.xlane.f32.xlu1 %v776_v4 }
 0x2f5   : > { %1051 = vrot.lane.b32.xlu1 %v712_v44, %s1744_s14 }
 0x32e   : > { %v849_v6 = vpop.xlane.xlu2 %848 }
 0x32f   : > { %v850_v7 = vsub.f32 %v846_v58, %v849_v6  ;;  %v1024_v6 = vld [vmem:[#allocation7 + $0x10] sm:$0xff] }
 0x331   : > { %v851_v9 = vmul.f32 1.442695, %v850_v7 }
 0x333   : > { %1522 = vpow2.f32 %v851_v9  ;;  %v1128_v9 = vld [vmem:[#allocation7 + $0x18] sm:$0xff] }
 0x339   : > { %v2042_v10 = vpop.eup %1522 }
 0x33a   : > { %v853_v11 = vsel %vm742_vm5, %v2042_v10, 0.0 }
 0x33b   : > { %854 = vadd.xlane.f32.xlu2 %v853_v11 }
 0x341   : > { %v976_v12 = vpop.xlane.xlu0 %975 }
 0x342   : > { %v977_v13 = vsub.f32 %v973_v61, %v976_v12 }
 0x344   : > { %v978_v15 = vmul.f32 1.442695, %v977_v13 }
 0x346   : > { %1524 = vpow2.f32 %v978_v15 }
 0x34c   : > { %v2046_v16 = vpop.eup %1524 }
 0x34d   : > { %v980_v17 = vsel %vm742_vm5, %v2046_v16, 0.0 }
 0x34e   : > { %981 = vadd.xlane.f32.xlu0 %v980_v17 }
 0x34f   : > { %v778_v18 = vpop.xlane.xlu1 %777 }
 0x350   : > { %1526 = vrcp.f32 %v778_v18  ;;  %v790_v22 = vand.u32 2147483648, %v778_v18  ;;  %v788_v24 = vand.u32 2147483647, %v778_v18  ;;  %vm784_vm7 = vweird.f32 %v778_v18 }
 0x352   : > { %v791_v26 = vor.u32 1.1754944e-38, %v790_v22  ;;  %vm789_vm9 = vcmp.eq.f32.partialorder %v788_v24, 8.507059e+37 }
 0x356   : > { %v1527_v19 = vpop.eup %1526 }
 0x357   : > { %v780_v20 = vmul.f32 %v1527_v19, %v778_v18  ;;  %vm785_vm6 = vweird.f32 %v1527_v19 }
 0x358   : > { %vm786_vm8 = vmor %vm784_vm7, %vm785_vm6 }
 0x359   : > { %v781_v21 = vsub.f32 1.0, %v780_v20 }
 0x35b   : > { %v782_v23 = vmul.f32 %v1527_v19, %v781_v21 }
 0x35d   : > { %v783_v25 = vadd.f32 %v1527_v19, %v782_v23 }
 0x35f   : > { %v787_v27 = vsel %vm786_vm8, %v1527_v19, %v783_v25 }
 0x360   : > { %v792_v28 = vsel %vm789_vm9, %v791_v26, %v787_v27 }
 0x361   : > { %v793_v29 = vmul.f32 %v1521_v3, %v792_v28 }
 0x362   : > { %998 = vrot.lane.b32.xlu0 %v2027_v49, %s1742_s21  ;;  %s1674_s21 = sshra.s32 %s1285_s0, 4  ;;  %s1675_s21 = int_to_ptr.hbm [resolvable:$true] %s1674_s21 }
 0x363   : > { %1403 = vmatmul.msk.f32.vlgmr.msra.gmra.mxu3 %vm742_vm5, %v793_v29  ;;  %p1681_p9 = scmp.lt.s32.totalorder %s1675_s21, %s2212_s18 }
 0x367   : > { %v1052_v30 = vpop.permute.xlu1 %1051 }
 0x368   : > { %1413 = vmatpush.xpose.msk.msra.mxu3 %vm742_vm5, %v1052_v30  ;;  %v1511_v30 = vld [vmem:[%s2169_s10] ss:$0 sm:$0xff] }
 0x3ae   : > { %v855_v36 = vpop.xlane.xlu2 %854 }
 0x3af   : > { %1528 = vrcp.f32 %v855_v36  ;;  %v867_v52 = vand.u32 2147483648, %v855_v36  ;;  %vm861_vm11 = vweird.f32 %v855_v36  ;;  %v865_v53 = vand.u32 2147483647, %v855_v36 }
 0x3b1   : > { %v868_v56 = vor.u32 1.1754944e-38, %v867_v52  ;;  %vm866_vm13 = vcmp.eq.f32.partialorder %v865_v53, 8.507059e+37  ;;  %v1512_v52 = vld [vmem:[%s2170_s11] ss:$0 sm:$0xff] }
 0x3b5   : > { %v1529_v38 = vpop.eup %1528 }
 0x3b6   : > { %v857_v41 = vmul.f32 %v1529_v38, %v855_v36  ;;  %vm862_vm10 = vweird.f32 %v1529_v38 }
 0x3b7   : > { %vm863_vm12 = vmor %vm861_vm11, %vm862_vm10  ;;  %vm1243_vm10 = vcmask 523264  }
 0x3b8   : > { %v858_v43 = vsub.f32 1.0, %v857_v41  ;;  %v1191_v41 = vld [vmem:[#allocation8] sm:$0xff] }
 0x3ba   : > { %v859_v45 = vmul.f32 %v1529_v38, %v858_v43 }
 0x3bc   : > { %v860_v50 = vadd.f32 %v1529_v38, %v859_v45 }
 0x3be   : > { %v864_v55 = vsel %vm863_vm12, %v1529_v38, %v860_v50 }
 0x3bf   : > { %v869_v57 = vsel %vm866_vm13, %v868_v56, %v864_v55 }
 0x3c0   : > { %v870_v62 = vmul.f32 %v2042_v10, %v869_v57  ;;  %v1238_v57 = vld [vmem:[%s2174_s15 + $0x38] sm:$0xff] }
 0x3c1   : > { %v982_v37 = vpop.xlane.xlu0 %981 }
 0x3c2   : > { %1530 = vrcp.f32 %v982_v37  ;;  %v994_v59 = vand.u32 2147483648, %v982_v37  ;;  %vm988_vm15 = vweird.f32 %v982_v37  ;;  %v992_v60 = vand.u32 2147483647, %v982_v37 }
 0x3c4   : > { %v995_v2 = vor.u32 1.1754944e-38, %v994_v59  ;;  %vm993_vm2 = vcmp.eq.f32.partialorder %v992_v60, 8.507059e+37  ;;  %v1236_v59 = vld [vmem:[%s2174_s15 + $0x28] sm:$0xff]  ;;  %v1235_v60 = vld [vmem:[%s2174_s15 + $0x20] sm:$0xff] }
 0x3c8   : > { %v1531_v44 = vpop.eup %1530 }
 0x3c9   : > { %v984_v46 = vmul.f32 %v1531_v44, %v982_v37  ;;  %vm989_vm14 = vweird.f32 %v1531_v44 }
 0x3ca   : > { %vm990_vm1 = vmor %vm988_vm15, %vm989_vm14 }
 0x3cb   : > { %v985_v51 = vsub.f32 1.0, %v984_v46 }
 0x3cd   : > { %v986_v54 = vmul.f32 %v1531_v44, %v985_v51 }
 0x3cf   : > { %v987_v58 = vadd.f32 %v1531_v44, %v986_v54 }
 0x3d1   : > { %v991_v63 = vsel %vm990_vm1, %v1531_v44, %v987_v58  ;;  %v1237_v58 = vld [vmem:[%s2174_s15 + $0x30] sm:$0xff] }
 0x3d2   : > { %v996_v3 = vsel %vm993_vm2, %v995_v2, %v991_v63  ;;  %v1232_v63 = vld [vmem:[%s2174_s15 + $0x8] sm:$0xff] }
 0x3d3   : > { %v997_v4 = vmul.f32 %v2046_v16, %v996_v3 }
 0x3d4   : > { %v999_v1 = vpop.permute.xlu0 %998 }
 0x3e6   : > { %v814_v31 = vpop.f32.mrf.mxu3 }
 0x3e7   : > { %1408 = vmatmul.msk.f32.vlgmr.msrb.gmra.mxu3 %vm742_vm5, %v814_v31 }
 0x3e8   : > { %1255 = vmatpush.msrb.mxu3 %v1238_v57 }
 0x3ea   : > { %1256 = vmatpush.msrb.mxu3 %v1237_v58 }
 0x3ec   : > { %1257 = vmatpush.msrb.mxu3 %v1236_v59 }
 0x3ee   : > { %1258 = vmatpush.msrb.mxu3 %v1235_v60 }
 0x3ef   : > { %1414 = vmatmul.msk.f32.vlgmr.msra.gmra.mxu3 %vm742_vm5, %v1050_v5  ;;  %v898_v5 = vld [vmem:[#allocation7 + $0x8] sm:$0xff] }
 0x3f0   : > { %917 = vmatpush.msrb.mxu2 %v898_v5 }
 0x3f2   : > { %1043 = vmatpush.msra.mxu2 %v1024_v6 }
 0x46a   : > { %v2056_v32 = vpop.f32.mrf.mxu3 }
 0x472   : > { %v1074_v33 = vpop.f32.mrf.mxu3 }
 0x473   : > { %v1077_v34 = vmul.f32 0.35355338, %v1074_v33 }
 0x475   : > { %v1078_v35 = vsel %vm742_vm5, %v1077_v34, -inf }
 0x476   : > { %1079 = vmax.xlane.f32.xlu1 %v1078_v35 }
 0x48f   : > { %872 = vrot.lane.b32.xlu1 %v2027_v49, %s1743_s20  ;;  %s2210_s20 = sld [smem:[#allocation25_spill]] }
 0x495   : > { %v1514_v2 = vld [vmem:[%s2210_s20] ss:$0 sm:$0xff]  ;;  %s1676_s20 = scalar_lea.hbm %s1675_s21, 8 }
 0x496   : > { %p1677_p1 = scmp.ne.s32.totalorder %s1675_s21, %s1676_s20  ;;  %p1682_p10 = scmp.lt.s32.totalorder %s1680_s19, %s1676_s20 }
 0x498   : > { %p1678_p4 = pnand %p1677_p1, %p1917_p3  ;;  %p1683_p2 = por %p1682_p10, %p1681_p9 }
 0x49a   : > { %p1679_p8 = pneg %p1678_p4 }
 0x49c   : > { %p1684_p11 = pnand %p1683_p2, %p1679_p8 }
 0x4e9   : > { %v1080_v39 = vpop.xlane.xlu1 %1079 }
 0x4ea   : > { %v1081_v40 = vsub.f32 %v1077_v34, %v1080_v39  ;;  %v1194_v39 = vld [vmem:[#allocation8 + $0x18] sm:$0xff] }
 0x4ec   : > { %v1082_v42 = vmul.f32 1.442695, %v1081_v40  ;;  %v1193_v40 = vld [vmem:[#allocation8 + $0x10] sm:$0xff] }
 0x4ee   : > { %1532 = vpow2.f32 %v1082_v42 }
 0x4f4   : > { %v1533_v47 = vpop.eup %1532 }
 0x4f5   : > { %v1084_v48 = vsel %vm742_vm5, %v1533_v47, 0.0 }
 0x4f6   : > { %1085 = vadd.xlane.f32.xlu2 %v1084_v48 }
 0x501   : > { %v873_v61 = vpop.permute.xlu1 %872 }
 0x502   : > { %893 = vmatpush.msrb.mxu1 %v873_v61  ;;  %v1234_v61 = vld [vmem:[%s2174_s15 + $0x18] sm:$0xff] }
 0x503   : > { %1406 = vmatmul.msk.f32.vlgmr.msrb.gmra.mxu1 %vm742_vm5, %v870_v62  ;;  %v1233_v62 = vld [vmem:[%s2174_s15 + $0x10] sm:$0xff]  ;;  %1259 = vmatpush.msrb.mxu3 %v1234_v61 }
 0x504   : > { %1019 = vmatpush.msra.mxu1 %v999_v1  ;;  %v1231_v1 = vld [vmem:[%s2174_s15] sm:$0xff] }
 0x505   : > { %1260 = vmatpush.msrb.mxu3 %v1233_v62 }
 0x506   : > { %1147 = vmatpush.msrb.mxu1 %v1128_v9 }
 0x507   : > { %1261 = vmatpush.msrb.mxu3 %v1232_v63 }
 0x509   : > { %1262 = vmatpush.msrb.mxu3 %v1231_v1 }
 0x50b   : > { %1411 = vmatmul.msk.f32.vlgmr.msra.gmra.mxu1 %vm742_vm5, %v997_v4 }
 0x50e   : > { %1102 = vrot.lane.b32.xlu2 %v2027_v49, %s1744_s14 }
 0x569   : > { %v1086_v7 = vpop.xlane.xlu2 %1085 }
 0x56a   : > { %1534 = vrcp.f32 %v1086_v7  ;;  %v1098_v14 = vand.u32 2147483648, %v1086_v7  ;;  %v1096_v16 = vand.u32 2147483647, %v1086_v7  ;;  %vm1092_vm4 = vweird.f32 %v1086_v7 }
 0x56c   : > { %v1099_v49 = vor.u32 1.1754944e-38, %v1098_v14  ;;  %vm1097_vm7 = vcmp.eq.f32.partialorder %v1096_v16, 8.507059e+37 }
 0x570   : > { %v1535_v10 = vpop.eup %1534 }
 0x571   : > { %v1088_v11 = vmul.f32 %v1535_v10, %v1086_v7  ;;  %v1103_v12 = vpop.permute.xlu2 %1102  ;;  %vm1093_vm3 = vweird.f32 %v1535_v10 }
 0x572   : > { %1123 = vmatpush.msra.mxu0 %v1103_v12  ;;  %vm1094_vm6 = vmor %vm1092_vm4, %vm1093_vm3 }
 0x573   : > { %v1089_v13 = vsub.f32 1.0, %v1088_v11 }
 0x575   : > { %v1090_v15 = vmul.f32 %v1535_v10, %v1089_v13 }
 0x577   : > { %v1091_v17 = vadd.f32 %v1535_v10, %v1090_v15  ;;  %v1515_v15 = vld [vmem:[%s2211_s29] ss:$0 sm:$0xff] }
 0x579   : > { %v1095_v18 = vsel %vm1094_vm6, %v1535_v10, %v1091_v17 }
 0x57a   : > { %v1100_v19 = vsel %vm1097_vm7, %v1099_v49, %v1095_v18 }
 0x57b   : > { %v1101_v20 = vmul.f32 %v1533_v47, %v1100_v19 }
 0x57d   : > { %1415 = vmatmul.msk.f32.vlgmr.msra.gmra.mxu0 %vm742_vm5, %v1101_v20 }
 0x580   : > { %v895_v21 = vpop.f32.mrf.mxu1 }
 0x581   : > { %1407 = vmatmul.msk.f32.vlgmr.msrb.gmra.mxu2 %vm742_vm5, %v895_v21 }
 0x582   : > { %1214 = vmatpush.msrb.mxu2 %v1194_v39 }
 0x584   : > { %1215 = vmatpush.msrb.mxu2 %v1193_v40 }
 0x588   : > { %v1021_v22 = vpop.f32.mrf.mxu1 }
 0x589   : > { %1412 = vmatmul.msk.f32.vlgmr.msra.gmra.mxu2 %vm742_vm5, %v1021_v22 }
 0x5fa   : > { %v1125_v23 = vpop.f32.mrf.mxu0 }
 0x5fb   : > { %1416 = vmatmul.msk.f32.vlgmr.msrb.gmra.mxu1 %vm742_vm5, %v1125_v23 }
 0x604   : > { %v919_v24 = vpop.f32.mrf.mxu2 }
 0x605   : > { %v943_v26 = vadd.f32 %v2056_v32, %v919_v24 }
 0x60c   : > { %v1045_v25 = vpop.f32.mrf.mxu2 }
 0x60d   : > { %v1048_v27 = vadd.f32 %v1045_v25, %v943_v26 }
 0x678   : > { %v1149_v28 = vpop.f32.mrf.mxu1 }
 0x679   : > { %v1152_v29 = vadd.f32 %v1149_v28, %v1048_v27 }
 0x67b   : > { %v1153_v31 = vadd.f32 %v1152_v29, %v1962_v0  ;;  %v1192_v0 = vld [vmem:[#allocation8 + $0x8] sm:$0xff] }
 0x67c   : > { %1216 = vmatpush.msrb.mxu2 %v1192_v0 }
 0x67d   : > { %v2077_v33 = vadd.f32 %v1511_v30, %v1153_v31 }
 0x67e   : > { %1217 = vmatpush.msrb.mxu2 %v1191_v41 }
 0x67f   : > { %v1161_v34 = vsel %vm617_vm0, %v2077_v33, 0.0 }
 0x680   : > { %1162 = vadd.xlane.f32.xlu0 %v1161_v34 }
 0x6f3   : > { %v1163_v35 = vpop.xlane.xlu0 %1162 }
 0x6f4   : > { %v1164_v36 = vmul.f32 %v1163_v35, %v1966_v8 }
 0x6f6   : > { %v1165_v32 = vsub.f32 %v2077_v33, %v1164_v36 }
 0x6f8   : > { %v1166_v37 = vmul.f32 %v1165_v32, %v1165_v32 }
 0x6fa   : > { %v1167_v38 = vsel %vm617_vm0, %v1166_v37, 0.0 }
 0x6fb   : > { %1168 = vadd.xlane.f32.xlu1 %v1167_v38 }
 0x76e   : > { %v1169_v42 = vpop.xlane.xlu1 %1168 }
 0x76f   : > { %v1170_v43 = vmul.f32 %v1169_v42, %v1966_v8  ;;  %v1513_v8 = vld [vmem:[%s2171_s12] ss:$0 sm:$0xff] }
 0x771   : > { %v1171_v44 = vadd.f32 1e-05, %v1170_v43 }
 0x773   : > { %1536 = vrsqrt.f32 %v1171_v44  ;;  %vm1178_vm8 = vweird.f32 %v1171_v44 }
 0x779   : > { %v1537_v45 = vpop.eup %1536 }
 0x77a   : > { %v1173_v46 = vmul.f32 %v1537_v45, %v1171_v44  ;;  %vm1179_vm5 = vweird.f32 %v1537_v45 }
 0x77b   : > { %vm1180_vm9 = vmor %vm1178_vm8, %vm1179_vm5 }
 0x77c   : > { %v1174_v47 = vmul.f32 %v1537_v45, %v1173_v46 }
 0x77e   : > { %v1175_v48 = vmul.f32 0.5, %v1174_v47 }
 0x780   : > { %v1176_v50 = vsub.f32 1.5, %v1175_v48 }
 0x782   : > { %v1177_v51 = vmul.f32 %v1537_v45, %v1176_v50 }
 0x784   : > { %v1181_v53 = vsel %vm1180_vm9, %v1537_v45, %v1177_v51 }
 0x785   : > { %v1182_v54 = vmul.f32 %v1181_v53, %v1165_v32 }
 0x787   : > { %v1186_v55 = vmul.f32 %v1512_v52, %v1182_v54 }
 0x789   : > { %v1190_v56 = vadd.f32 %v1513_v8, %v1186_v55 }
 0x78b   : > { %1417 = vmatmul.msk.f32.vlgmr.msrb.gmra.mxu2 %vm617_vm0, %v1190_v56 }
 0x80e   : > { %v1219_v3 = vpop.f32.mrf.mxu2 }
 0x80f   : > { %v1220_v4 = vadd.f32 %v1514_v2, %v1219_v3 }
 0x811   : > { %v1223_v5 = vmul.f32 0.044715, %v1220_v4  ;;  %v1222_v12 = vmul.f32 0.5, %v1220_v4 }
 0x813   : > { %v1224_v6 = vmul.f32 %v1223_v5, %v1220_v4 }
 0x815   : > { %v1225_v7 = vmul.f32 %v1224_v6, %v1220_v4 }
 0x817   : > { %v1226_v9 = vadd.f32 %v1225_v7, %v1220_v4 }
 0x819   : > { %v1227_v10 = vmul.f32 0.7978846, %v1226_v9 }
 0x81b   : > { %1538 = vtanh.f32 %v1227_v10 }
 0x821   : > { %v1539_v11 = vpop.eup %1538 }
 0x822   : > { %v1229_v13 = vadd.f32 1.0, %v1539_v11 }
 0x824   : > { %v1230_v14 = vmul.f32 %v1229_v13, %v1222_v12 }
 0x826   : > { %1418 = vmatmul.msk.f32.vlgmr.msrb.gmra.mxu3 %vm1243_vm10, %v1230_v14 }
 0x8a9   : > { %v1264_v16 = vpop.f32.mrf.mxu3 }
 0x8aa   : > { %v1265_v17 = vadd.f32 %v1515_v15, %v1264_v16 }
 0x8ac   : > { %v1267_v49 = vadd.f32 %v1265_v17, %v2077_v33 }
 0x8ae   : > { %1268 = vst.msk [vmem:[%s613_s26] sm:$0xff] %vm617_vm0, %v1267_v49 }
 0x8af   : > { %1687 = shalt.err (!%p1684_p11)
}
 0x8b0   : > { %1437 = dma.vmem_to_hbm [thread:$0]  (%p1917_p3), %s1283_s13, 128, %s1285_s0, %s1270_s28  }
 0x8b1 PF: > { %s2214_s1 = sld [smem:[#allocation15_spill]]  ;;  %p2216_p12 = scmp.ge.s32.totalorder %s1734_s27, 2 }
 0x8b3   : > { %p1454_p13 = pnand %p2216_p12, %p1870_p6 }
 0x8b5   : > { %p1455_p0 = pneg %p1454_p13 }
 0x8b7   : > { %s1296_s16 = sand.u32 1, %s2214_s1  }
 0x8b8   : > { %s1297_s23 = scalar_lea.sflag [#allocation4], %s1296_s16 }
 0x8b9   : > { %1717 = dma.done.wait (%p1455_p0), %s1297_s23, 128  }
 0x8ba   : > { %1719 = vsyncadd (%p1455_p0), %s1297_s23, 4294967168  ;;  %s2217_s27 = sld [smem:[#allocation18_spill]]  ;;  %s2220_s24 = smov %s1726_s25 }
 0x8bb   : > { %s2218_s26 = sld [smem:[#allocation16_spill]] }
 0x8bc   : > { %s2219_s21 = sld [smem:[#allocation19_spill]] }
 0x8c0   : > { %p32_p5 = scmp.ge.s32.totalorder %s2217_s27, 4  }
 0x8c1   : > { %s2221_s25 = smov %s2218_s26 }
 0x8c2   : > { %s2222_s26 = smov %s2219_s21  ;;  %34 = sbr.rel (!%p32_p5) target bundleno = 15 (0xf), region = 145 }
 0x8c7   :  { %1303 = vsyncpa [#allocation3], 1 }
 0x8c8   :  { %1305 = vsyncpa [#allocation3 + $0x1], 1 }
 0x8c9   :  { %1306 = vsyncpa [#allocation6], 1 }
 0x8ca   :  { %1307 = vsyncpa [#allocation9], 1 }
 0x8cb   :  { %1308 = vsyncpa [#allocation4], 1 }
 0x8cc   :  { %1310 = vsyncpa [#allocation4 + $0x1], 1 }

</bundles_post_ra>
